<compile_context>
chip_gen: v7x
topology: tpu7x:2x2x1
jax: 0.10.0
libtpu: 0.0.40
codegen_flags: <defaults>
</compile_context>

<pallas_src>
import functools

import jax
import jax.numpy as jnp
from jax.experimental import pallas as pl
from jax.experimental.pallas import tpu as pltpu

LANES = 128
SUBLANES = 8
MIN_ROWS_FOR_SPLIT = 1024          # use 2 parallel chunks only above this
VMEM_LIMIT_BYTES = 32 * 1024 * 1024


def _dice_sums_kernel(x_ref, t_ref, out_ref, acc_prod, acc_tot, *,
                      rows_per_chunk, tile_rows):
    # Grid = (chunk [parallel], tile [arbitrary/reduction]).
    i = pl.program_id(1)
    n_i = pl.num_programs(1)

    @pl.when(i == 0)
    def _init():
        acc_prod[...] = jnp.zeros_like(acc_prod)
        acc_tot[...] = jnp.zeros_like(acc_tot)

    x = x_ref[...].astype(jnp.float32)
    t = t_ref[...].astype(jnp.float32)

    def accumulate(xv, tv):
        # (tile_rows,128) -> (tile_rows/8, 8, 128): stays on vreg boundaries,
        # sum(axis=0) is pure cross-vreg VALU adds into one (8,128) vreg.
        prod = (xv * tv).reshape(tile_rows // SUBLANES, SUBLANES, LANES)
        tot = (xv + tv).reshape(tile_rows // SUBLANES, SUBLANES, LANES)
        acc_prod[...] += jnp.sum(prod, axis=0)
        acc_tot[...] += jnp.sum(tot, axis=0)

    rem = rows_per_chunk % tile_rows  # static
    if rem == 0:
        accumulate(x, t)
    else:
        # Only the last tile of each chunk is a partial boundary block; mask
        # the garbage rows there, keep all other steps unmasked.
        @pl.when(i < n_i - 1)
        def _full():
            accumulate(x, t)

        @pl.when(i == n_i - 1)
        def _ragged():
            row_ids = jax.lax.broadcasted_iota(jnp.int32, (tile_rows, LANES), 0)
            mask = row_ids < rem
            accumulate(jnp.where(mask, x, 0.0), jnp.where(mask, t, 0.0))

    @pl.when(i == n_i - 1)
    def _finalize():
        # One-time sublane reduce (XLU) + lane-dense (2,128) output write.
        out_ref[0:1, :] = jnp.sum(acc_prod[...], axis=0, keepdims=True)
        out_ref[1:2, :] = jnp.sum(acc_tot[...], axis=0, keepdims=True)


def dice_loss(inputs, targets, smooth=1.0):
    """Pallas-backed equivalent of dice_func.forward (1 - dice coefficient)."""
    assert inputs.shape == targets.shape
    x = inputs.reshape(-1)   # keep native dtype; cast to f32 inside the kernel
    t = targets.reshape(-1)
    n = x.shape[0]

    rows = -(-n // LANES)
    num_chunks = 2 if rows >= MIN_ROWS_FOR_SPLIT else 1
    row_align = SUBLANES * num_chunks
    rows_padded = -(-rows // row_align) * row_align
    n_padded = rows_padded * LANES
    if n_padded != n:
        # Tiny exact zero-pad: <= (lane remainder + 2*8 rows).  Zeros add
        # nothing to either sum.  Typical NCHW tensors hit the no-pad path.
        x = jnp.pad(x, (0, n_padded - n))
        t = jnp.pad(t, (0, n_padded - n))

    rows_per_chunk = rows_padded // num_chunks
    x3 = x.reshape(num_chunks, rows_per_chunk, LANES)
    t3 = t.reshape(num_chunks, rows_per_chunk, LANES)

    # Dtype-aware tile size: keep the same VMEM footprint while streaming
    # more elements per step for narrow dtypes.
    itemsize = max(x.dtype.itemsize, t.dtype.itemsize)
    if itemsize >= 4:
        max_tile_rows = 2048      # 2 inputs x 2 bufs x 1 MiB = 4 MiB
    elif itemsize == 2:
        max_tile_rows = 4096
    else:
        max_tile_rows = 8192
    tile_rows = min(max_tile_rows, rows_per_chunk)   # multiple of 8
    tiles_per_chunk = pl.cdiv(rows_per_chunk, tile_rows)

    kernel = functools.partial(_dice_sums_kernel,
                               rows_per_chunk=rows_per_chunk,
                               tile_rows=tile_rows)

    partials = pl.pallas_call(
        kernel,
        out_shape=jax.ShapeDtypeStruct((num_chunks, 2, LANES), jnp.float32),
        grid_spec=pltpu.PrefetchScalarGridSpec(
            num_scalar_prefetch=0,
            grid=(num_chunks, tiles_per_chunk),
            in_specs=[
                pl.BlockSpec((None, tile_rows, LANES), lambda c, i: (c, i, 0)),
                pl.BlockSpec((None, tile_rows, LANES), lambda c, i: (c, i, 0)),
            ],
            out_specs=pl.BlockSpec((None, 2, LANES), lambda c, i: (c, 0, 0)),
            scratch_shapes=[
                pltpu.VMEM((SUBLANES, LANES), jnp.float32),  # sum(x*t) partials
                pltpu.VMEM((SUBLANES, LANES), jnp.float32),  # sum(x+t) partials
            ],
        ),
        compiler_params=pltpu.CompilerParams(
            # chunk axis shards across TensorCores on v7x; reduction axis
            # carries the accumulators.
            dimension_semantics=("parallel", "arbitrary"),
            vmem_limit_bytes=VMEM_LIMIT_BYTES,
        ),
    )(x3, t3)

    intersection = jnp.sum(partials[:, 0, :])
    total = jnp.sum(partials[:, 1, :])
    dice = (2.0 * intersection + smooth) / (total + smooth)
    return 1.0 - dice


def dice_loss_ref(inputs, targets, smooth=1.0):
    intersection = jnp.sum(inputs * targets)
    dice = (2.0 * intersection + smooth) / (jnp.sum(inputs + targets) + smooth)
    return 1.0 - dice


if __name__ == "__main__":
    key = jax.random.PRNGKey(0)
    k1, k2, k3, k4, k5, k6 = jax.random.split(key, 6)

    # small NCHW-shaped example consistent with a segmentation dice loss
    inputs = jax.nn.sigmoid(jax.random.normal(k1, (2, 4, 16, 16), jnp.float32))
    targets = (jax.random.uniform(k2, (2, 4, 16, 16)) > 0.5).astype(jnp.float32)
    out = jax.block_until_ready(dice_loss(inputs, targets, smooth=1.0))
    ref = dice_loss_ref(inputs, targets, smooth=1.0)
    assert jnp.allclose(out, ref, rtol=1e-5, atol=1e-6), (out, ref)

    # ragged-shape check: exercises the lane/row zero-pad path
    a = jax.nn.sigmoid(jax.random.normal(k3, (3, 5, 7, 11), jnp.float32))
    b = (jax.random.uniform(k4, (3, 5, 7, 11)) > 0.5).astype(jnp.float32)
    out2 = jax.block_until_ready(dice_loss(a, b, smooth=1.0))
    ref2 = dice_loss_ref(a, b, smooth=1.0)
    assert jnp.allclose(out2, ref2, rtol=1e-5, atol=1e-6), (out2, ref2)

    # medium check: exercises the 2-chunk parallel split, multiple tiles per
    # chunk, and the pl.when-guarded ragged last-tile mask
    c = jax.nn.sigmoid(jax.random.normal(k5, (4, 4, 192, 192), jnp.float32))
    d = (jax.random.uniform(k6, (4, 4, 192, 192)) > 0.5).astype(jnp.float32)
    out3 = jax.block_until_ready(dice_loss(c, d, smooth=1.0))
    ref3 = dice_loss_ref(c, d, smooth=1.0)
    assert jnp.allclose(out3, ref3, rtol=1e-4, atol=1e-5), (out3, ref3)

    print("KERNEL_OK")
</pallas_src>

<mosaic_0001>
module attributes {stable_mosaic.version = 11 : i64} {
  func.func @_dice_sums_kernel(%arg0: i32, %arg1: i32, %arg2: memref<1x16x128xf32, #tpu.memory_space<vmem>>, %arg3: memref<1x16x128xf32, #tpu.memory_space<vmem>>, %arg4: memref<1x2x128xf32, #tpu.memory_space<vmem>>, %arg5: memref<8x128xf32, #tpu.memory_space<vmem>>, %arg6: memref<8x128xf32, #tpu.memory_space<vmem>>) attributes {dimension_semantics = [#tpu.dimension_semantics<parallel>, #tpu.dimension_semantics<arbitrary>], iteration_bounds = array<i64: 1, 1>, scalar_prefetch = 0 : i64, scratch_operands = 2 : i64, tpu.core_type = #tpu.core_type<tc>, window_params = [{transform_indices = @transform_0, window_bounds = array<i64: 1, 16, 128>}, {transform_indices = @transform_1, window_bounds = array<i64: 1, 16, 128>}, {transform_indices = @transform_2, window_bounds = array<i64: 1, 2, 128>}]} {
    %c0_i32 = arith.constant 0 : i32
    %0 = arith.cmpi eq, %arg1, %c0_i32 : i32
    %1 = arith.extui %0 : i1 to i32
    %c0_i32_0 = arith.constant 0 : i32
    %2 = arith.cmpi ne, %1, %c0_i32_0 : i32
    scf.if %2 {
      %cst_17 = arith.constant 0.000000e+00 : f32
      %22 = vector.broadcast %cst_17 : f32 to vector<8x128xf32>
      %c0_18 = arith.constant 0 : index
      %c0_19 = arith.constant 0 : index
      %23 = vector.load %arg5[%c0_18, %c0_19] : memref<8x128xf32, #tpu.memory_space<vmem>>, vector<8x128xf32>
      tpu.vector_store %arg5[%c0_18, %c0_19], %22 {strides = array<i32>} : memref<8x128xf32, #tpu.memory_space<vmem>>, vector<8x128xf32>,
      %cst_20 = arith.constant 0.000000e+00 : f32
      %24 = vector.broadcast %cst_20 : f32 to vector<8x128xf32>
      %c0_21 = arith.constant 0 : index
      %c0_22 = arith.constant 0 : index
      %25 = vector.load %arg6[%c0_21, %c0_22] : memref<8x128xf32, #tpu.memory_space<vmem>>, vector<8x128xf32>
      tpu.vector_store %arg6[%c0_21, %c0_22], %24 {strides = array<i32>} : memref<8x128xf32, #tpu.memory_space<vmem>>, vector<8x128xf32>,
    } else {
    }
    %c0 = arith.constant 0 : index
    %c0_1 = arith.constant 0 : index
    %c0_2 = arith.constant 0 : index
    %3 = vector.load %arg2[%c0, %c0_1, %c0_2] : memref<1x16x128xf32, #tpu.memory_space<vmem>>, vector<1x16x128xf32>
    %4 = vector.shape_cast %3 : vector<1x16x128xf32> to vector<16x128xf32>
    %c0_3 = arith.constant 0 : index
    %c0_4 = arith.constant 0 : index
    %c0_5 = arith.constant 0 : index
    %5 = vector.load %arg3[%c0_3, %c0_4, %c0_5] : memref<1x16x128xf32, #tpu.memory_space<vmem>>, vector<1x16x128xf32>
    %6 = vector.shape_cast %5 : vector<1x16x128xf32> to vector<16x128xf32>
    %7 = arith.mulf %4, %6 : vector<16x128xf32>
    %8 = vector.shape_cast %7 : vector<16x128xf32> to vector<2x8x128xf32>
    %9 = arith.addf %4, %6 : vector<16x128xf32>
    %10 = vector.shape_cast %9 : vector<16x128xf32> to vector<2x8x128xf32>
    %c0_6 = arith.constant 0 : index
    %c0_7 = arith.constant 0 : index
    %11 = vector.load %arg5[%c0_6, %c0_7] : memref<8x128xf32, #tpu.memory_space<vmem>>, vector<8x128xf32>
    %cst = arith.constant dense<0.000000e+00> : vector<8x128xf32>
    %12 = vector.multi_reduction <add>, %8, %cst [0] : vector<2x8x128xf32> to vector<8x128xf32>
    %13 = arith.addf %11, %12 : vector<8x128xf32>
    %c0_8 = arith.constant 0 : index
    %c0_9 = arith.constant 0 : index
    %14 = vector.load %arg5[%c0_8, %c0_9] : memref<8x128xf32, #tpu.memory_space<vmem>>, vector<8x128xf32>
    tpu.vector_store %arg5[%c0_8, %c0_9], %13 {strides = array<i32>} : memref<8x128xf32, #tpu.memory_space<vmem>>, vector<8x128xf32>,
    %c0_10 = arith.constant 0 : index
    %c0_11 = arith.constant 0 : index
    %15 = vector.load %arg6[%c0_10, %c0_11] : memref<8x128xf32, #tpu.memory_space<vmem>>, vector<8x128xf32>
    %cst_12 = arith.constant dense<0.000000e+00> : vector<8x128xf32>
    %16 = vector.multi_reduction <add>, %10, %cst_12 [0] : vector<2x8x128xf32> to vector<8x128xf32>
    %17 = arith.addf %15, %16 : vector<8x128xf32>
    %c0_13 = arith.constant 0 : index
    %c0_14 = arith.constant 0 : index
    %18 = vector.load %arg6[%c0_13, %c0_14] : memref<8x128xf32, #tpu.memory_space<vmem>>, vector<8x128xf32>
    tpu.vector_store %arg6[%c0_13, %c0_14], %17 {strides = array<i32>} : memref<8x128xf32, #tpu.memory_space<vmem>>, vector<8x128xf32>,
    %c0_i32_15 = arith.constant 0 : i32
    %19 = arith.cmpi eq, %arg1, %c0_i32_15 : i32
    %20 = arith.extui %19 : i1 to i32
    %c0_i32_16 = arith.constant 0 : i32
    %21 = arith.cmpi ne, %20, %c0_i32_16 : i32
    scf.if %21 {
      %c0_17 = arith.constant 0 : index
      %c0_18 = arith.constant 0 : index
      %22 = vector.load %arg5[%c0_17, %c0_18] : memref<8x128xf32, #tpu.memory_space<vmem>>, vector<8x128xf32>
      %cst_19 = arith.constant dense<0.000000e+00> : vector<128xf32>
      %23 = vector.multi_reduction <add>, %22, %cst_19 [0] : vector<8x128xf32> to vector<128xf32>
      %24 = vector.shape_cast %23 : vector<128xf32> to vector<1x128xf32>
      %c0_20 = arith.constant 0 : index
      %c0_21 = arith.constant 0 : index
      %c0_22 = arith.constant 0 : index
      %25 = vector.load %arg4[%c0_20, %c0_21, %c0_22] : memref<1x2x128xf32, #tpu.memory_space<vmem>>, vector<1x1x128xf32>
      %26 = vector.shape_cast %25 : vector<1x1x128xf32> to vector<1x128xf32>
      %27 = vector.shape_cast %24 : vector<1x128xf32> to vector<1x1x128xf32>
      tpu.vector_store %arg4[%c0_20, %c0_21, %c0_22], %27 {strides = array<i32>} : memref<1x2x128xf32, #tpu.memory_space<vmem>>, vector<1x1x128xf32>,
      %c0_23 = arith.constant 0 : index
      %c0_24 = arith.constant 0 : index
      %28 = vector.load %arg6[%c0_23, %c0_24] : memref<8x128xf32, #tpu.memory_space<vmem>>, vector<8x128xf32>
      %cst_25 = arith.constant dense<0.000000e+00> : vector<128xf32>
      %29 = vector.multi_reduction <add>, %28, %cst_25 [0] : vector<8x128xf32> to vector<128xf32>
      %30 = vector.shape_cast %29 : vector<128xf32> to vector<1x128xf32>
      %c0_26 = arith.constant 0 : index
      %c1 = arith.constant 1 : index
      %c0_27 = arith.constant 0 : index
      %31 = vector.load %arg4[%c0_26, %c1, %c0_27] : memref<1x2x128xf32, #tpu.memory_space<vmem>>, vector<1x1x128xf32>
      %32 = vector.shape_cast %31 : vector<1x1x128xf32> to vector<1x128xf32>
      %33 = vector.shape_cast %30 : vector<1x128xf32> to vector<1x1x128xf32>
      tpu.vector_store %arg4[%c0_26, %c1, %c0_27], %33 {strides = array<i32>} : memref<1x2x128xf32, #tpu.memory_space<vmem>>, vector<1x1x128xf32>,
    } else {
    }
    return
  }
  func.func @transform_0(%arg0: i32, %arg1: i32) -> (i32, i32, i32) {
    %c0_i32 = arith.constant 0 : i32
    %c0_i32_0 = arith.constant 0 : i32
    return %arg0, %arg1, %c0_i32 : i32, i32, i32
  }
  func.func @transform_1(%arg0: i32, %arg1: i32) -> (i32, i32, i32) {
    %c0_i32 = arith.constant 0 : i32
    %c0_i32_0 = arith.constant 0 : i32
    return %arg0, %arg1, %c0_i32 : i32, i32, i32
  }
  func.func @transform_2(%arg0: i32, %arg1: i32) -> (i32, i32, i32) {
    %c0_i32 = arith.constant 0 : i32
    %c0_i32_0 = arith.constant 0 : i32
    %c0_i32_1 = arith.constant 0 : i32
    return %arg0, %c0_i32, %c0_i32_0 : i32, i32, i32
  }
}

</mosaic_0001>

<bundles_post_ra>
// kernel: tpu_custom_call.1
= control target key start
LH: loop header
LB: loop body
LE: loop exit
PB: predicated region body
PF: predicated region fallthrough
CT: control target
= control target key end

     0   :  { %7 = vsyncpa [#allocation5], 0  ;;  %s230_s0 = inlined_call_operand.hbm [shape: f32[1,16,128], index: 0, kind: input, shape index: {}]   ;;  %s231_s1 = inlined_call_operand.hbm [shape: f32[1,16,128], index: 1, kind: input, shape index: {}]   ;;  %s232_s2 = inlined_call_operand.hbm [shape: f32[1,2,128], index: 2, kind: output, shape index: {}]  }
   0x1   :  { %8 = vsyncpa [#allocation8], 0 }
   0x2   :  { %9 = vsyncpa [#allocation6], 0  ;;  %s174_s9 = smov [#allocation4]   ;;  %s102_s13 = scalar_lea.hbm %s230_s0, 256 }
   0x3   :  { %s15_s10 = sshll.u32 %s174_s9, 4  ;;  %p103_p0 = scmp.ne.s32.totalorder %s230_s0, %s102_s13  ;;  %s16_s10 = int_to_ptr.vmem [resolvable:$true] %s15_s10 }
   0x4   :  { %p106_p1 = scmp.lt.u32.totalorder %s102_s13, %s230_s0 }
   0x6   :  { %p108_p2 = pnand %p106_p1, %p103_p0 }
   0x8   :  { %111 = shalt.err (!%p108_p2)
}
   0x9   :  { %s112_s18 = scalar_lea.vmem %s16_s10, 256  ;;  %p117_p4 = scmp.lt.s32.totalorder %s16_s10, %s16_s10 }
   0xa   :  { %p113_p3 = scmp.ne.s32.totalorder %s16_s10, %s112_s18  ;;  %p118_p5 = scmp.lt.s32.totalorder %s112_s18, %s112_s18 }
   0xc   :  { %p119_p6 = por %p118_p5, %p117_p4 }
   0xe   :  { %p120_p7 = pnand %p119_p6, %p113_p3 }
  0x10   :  { %123 = shalt.err (!%p120_p7)
}
  0x11   :  { %s175_s19 = smov 128   ;;  %s176_s20 = smov 8  }
  0x12   :  { %21 = dma.hbm_to_vmem [thread:$0]  %s230_s0, 256, %s16_s10, [#allocation5], %s175_s19, %s175_s19, %s176_s20  }
  0x13   :  { %s177_s23 = smov [#allocation7]   ;;  %s124_s27 = scalar_lea.hbm %s231_s1, 256 }
  0x14   :  { %s27_s24 = sshll.u32 %s177_s23, 4  ;;  %p125_p8 = scmp.ne.s32.totalorder %s231_s1, %s124_s27  ;;  %s28_s24 = int_to_ptr.vmem [resolvable:$true] %s27_s24 }
  0x15   :  { %p128_p9 = scmp.lt.u32.totalorder %s124_s27, %s231_s1 }
  0x17   :  { %p130_p10 = pnand %p128_p9, %p125_p8 }
  0x19   :  { %133 = shalt.err (!%p130_p10)
}
  0x1a   :  { %s134_s4 = scalar_lea.vmem %s28_s24, 256  ;;  %p139_p12 = scmp.lt.s32.totalorder %s28_s24, %s28_s24 }
  0x1b   :  { %p135_p11 = scmp.ne.s32.totalorder %s28_s24, %s134_s4  ;;  %p140_p13 = scmp.lt.s32.totalorder %s134_s4, %s134_s4 }
  0x1d   :  { %p141_p0 = por %p140_p13, %p139_p12 }
  0x1f   :  { %p142_p1 = pnand %p141_p0, %p135_p11 }
  0x21   :  { %145 = shalt.err (!%p142_p1)
}
  0x22   :  { %33 = dma.hbm_to_vmem [thread:$0]  %s231_s1, 256, %s28_s24, [#allocation8], %s175_s19, %s175_s19, %s176_s20  }
  0x23   :  { %168 = dma.done.wait [#allocation5], 256  }
  0x24   :  { %169 = vsyncadd [#allocation5], 4294967040 }
  0x25   :  { %170 = dma.done.wait [#allocation8], 256  }
  0x26   :  { %171 = vsyncadd [#allocation8], 4294967040  ;;  %v46_v0 = vld [vmem:[#allocation4] sm:$0xff]  ;;  %v47_v1 = vld [vmem:[#allocation4 + $0x8] sm:$0xff]  ;;  %s178_s1 = smov [#allocation9]  }
  0x27   :  { %v48_v2 = vld [vmem:[#allocation7] sm:$0xff]  ;;  %v49_v3 = vld [vmem:[#allocation7 + $0x8] sm:$0xff]  ;;  %s87_s6 = sshll.u32 %s178_s1, 4  ;;  %s88_s6 = int_to_ptr.vmem [resolvable:$true] %s87_s6 }
  0x28   :  { %v50_v4 = vmul.f32 %v48_v2, %v46_v0  ;;  %v52_v5 = vadd.f32 %v48_v2, %v46_v0  ;;  %v51_v6 = vmul.f32 %v49_v3, %v47_v1  ;;  %v53_v7 = vadd.f32 %v49_v3, %v47_v1  ;;  %s146_s7 = scalar_lea.vmem %s88_s6, 32  ;;  %p151_p3 = scmp.lt.s32.totalorder %s88_s6, %s88_s6 }
  0x29   :  { %p147_p2 = scmp.ne.s32.totalorder %s88_s6, %s146_s7  ;;  %p152_p4 = scmp.lt.s32.totalorder %s146_s7, %s146_s7 }
  0x2a   :  { %v55_v8 = vadd.f32 %v51_v6, %v50_v4  ;;  %v59_v9 = vadd.f32 %v53_v7, %v52_v5 }
  0x2b   :  { %p153_p5 = por %p152_p4, %p151_p3 }
  0x2c   :  { %v66_v10 = vrot.slane %v55_v8, 4  ;;  %v74_v11 = vrot.slane %v59_v9, 4 }
  0x2d   :  { %p154_p6 = pnand %p153_p5, %p147_p2 }
  0x2e   :  { %v67_v12 = vadd.f32 %v66_v10, %v55_v8  ;;  %v75_v13 = vadd.f32 %v74_v11, %v59_v9 }
  0x30   :  { %v68_v14 = vrot.slane %v67_v12, 2  ;;  %v76_v15 = vrot.slane %v75_v13, 2 }
  0x32   :  { %v69_v16 = vadd.f32 %v68_v14, %v67_v12  ;;  %v77_v17 = vadd.f32 %v76_v15, %v75_v13 }
  0x34   :  { %v70_v18 = vrot.slane %v69_v16, 1  ;;  %v78_v19 = vrot.slane %v77_v17, 1 }
  0x36   :  { %v71_v20 = vadd.f32 %v70_v18, %v69_v16  ;;  %v79_v21 = vadd.f32 %v78_v19, %v77_v17 }
  0x38   :  { %72 = vst [vmem:[#allocation9] sm:$0x1] %v71_v20  ;;  %80 = vst [vmem:[#allocation9 + $0x1] sm:$0x1] %v79_v21 }
  0x39   :  { %157 = shalt.err (!%p154_p6)
}
  0x3a   :  { %s158_s10 = scalar_lea.hbm %s232_s2, 32 }
  0x3b   :  { %p159_p7 = scmp.ne.s32.totalorder %s232_s2, %s158_s10  ;;  %p162_p8 = scmp.lt.u32.totalorder %s158_s10, %s232_s2 }
  0x3d   :  { %p164_p9 = pnand %p162_p8, %p159_p7 }
  0x3f   :  { %167 = shalt.err (!%p164_p9)
}
  0x40   :  { %90 = dma.vmem_to_hbm [thread:$0]  %s88_s6, 32, %s232_s2, [#allocation6]  }
  0x41   :  { %172 = dma.done.wait [#allocation6], 32  }
  0x42   :  { %173 = vsyncadd [#allocation6], 4294967264 }
  0x43   :  { %94 = vsyncpa [#allocation5], 1 }
  0x44   :  { %95 = vsyncpa [#allocation8], 1 }
  0x45   :  { %96 = vsyncpa [#allocation6], 1 }

</bundles_post_ra>
